<compile_context>
chip_gen: v5e
topology: v5e:2x2
jax: 0.10.0
libtpu: 0.0.40
codegen_flags: <defaults>
</compile_context>

<pallas_src>
import functools

import jax
import jax.numpy as jnp
import numpy as np
from jax import lax
from jax.experimental import pallas as pl
from jax.experimental.pallas import tpu as pltpu

# Constructor hyper-parameters of UnitedWeightedLossSumCtr (deterministic, in-script)
ALPHA = 0.5
BETA = 1.01          # unused in 'normal' mode
OFFSET = 0.0
CTR_WEIGHT = 1.0

# Explicit scoped-VMEM budget: well under v7x's 64 MiB physical, above the 16 MiB v5e default.
VMEM_LIMIT_BYTES = 32 * 1024 * 1024


def _round_up(x, m):
    return (x + m - 1) // m * m


def _make_pass1_kernel(n, c, nl, row_tile):
    inv_n = 1.0 / float(n)

    def kernel(p_row_ref, t0_row_ref, t0_col_ref, logits_ref, t1_ref, sw_ref, stats_ref):
        i = pl.program_id(0)

        p_row = p_row_ref[...]            # (1, nl)        f32 click probabilities (all samples)
        t0_row = t0_row_ref[...]          # (1, nl)        f32 click labels (all samples)
        t0_col = t0_col_ref[...]          # (row_tile, 1)  f32 click labels (tile rows)
        logits = logits_ref[...]          # (row_tile, c)  f32 conversion logits (tile rows)
        t1_all = t1_ref[...]              # (nl, 1)        i32 conversion labels (all samples)

        # ---- BCE (PyTorch clamp at -100), computed once in lane-major layout ----
        log_p = jnp.maximum(jnp.log(p_row), -100.0)
        log_1mp = jnp.maximum(jnp.log(1.0 - p_row), -100.0)
        bce_row = -(t0_row * log_p + (1.0 - t0_row) * log_1mp)      # (1, nl)

        mask_row = (t0_row > 0.0).astype(jnp.float32)               # (1, nl)
        mask_col = (t0_col > 0.0).astype(jnp.float32)               # (row_tile, 1)
        col_idx = lax.broadcasted_iota(jnp.int32, (1, nl), 1)
        valid_row = (col_idx < n).astype(jnp.float32)               # 1 for real samples

        # ---- per-tile cross-entropy over selected rows (target0 > 0) ----
        row0 = pl.multiple_of(i * row_tile, row_tile)
        t1_tile = t1_ref[pl.ds(row0, row_tile), :]                  # (row_tile, 1) i32
        cls_tile = lax.broadcasted_iota(jnp.int32, (row_tile, c), 1)
        onehot_rows = (cls_tile == t1_tile).astype(jnp.float32)     # in-kernel one-hot (f32)
        m = jnp.max(logits, axis=-1, keepdims=True)
        lse = m + jnp.log(jnp.sum(jnp.exp(logits - m), axis=-1, keepdims=True))
        tgt = jnp.sum(logits * onehot_rows, axis=-1, keepdims=True)
        ce = lse - tgt                                              # (row_tile, 1)
        ce_part = jnp.sum(ce * mask_col)

        # ---- un-normalized sample-weight tile; g[r, j] = logits[r, target1[j]] ----
        cls_all = lax.broadcasted_iota(jnp.int32, (nl, c), 1)
        onehot_cols = (cls_all == t1_all).astype(jnp.bfloat16)      # exact 0/1 in bf16
        g = lax.dot_general(logits.astype(jnp.bfloat16), onehot_cols,
                            (((1,), (1,)), ((), ())),
                            preferred_element_type=jnp.float32)     # (row_tile, nl) on MXU
        w = (1.0 - g + OFFSET + CTR_WEIGHT * bce_row) * mask_col * mask_row
        sw_ref[...] = w
        sumw_part = jnp.sum(w)

        # ---- scalar stats accumulated in the resident (1, 128) output block ----
        lane = lax.broadcasted_iota(jnp.int32, (1, 128), 1)

        @pl.when(i == 0)
        def _():
            loss1 = jnp.sum(bce_row * valid_row) * inv_n            # BCE mean over all N
            n_sel = jnp.sum(mask_row)                               # M = #selected samples
            stats_ref[...] = (jnp.where(lane == 0, loss1, 0.0)
                              + jnp.where(lane == 2, n_sel, 0.0))

        stats_ref[...] += (jnp.where(lane == 1, ce_part, 0.0)
                           + jnp.where(lane == 3, sumw_part, 0.0))

    return kernel


def _scale_kernel(scale_ref, w_ref, o_ref):
    # Pass 2: fold the normalization into one scalar multiply, in place via aliasing.
    o_ref[...] = w_ref[...] * scale_ref[0, 0]


@functools.partial(jax.jit, static_argnames=("row_tile",))
def united_weighted_loss_sum_ctr(input0, input1, target0, target1, *, row_tile=128):
    """Returns (loss1 + alpha*loss2, zero-padded (Nr, Nl) sample_weight).

    The PyTorch (M, M) sample_weight is the [sel, sel] sub-block of result[:N, :N].
    """
    n, c = input1.shape
    assert (row_tile % 8 == 0 and 128 % row_tile == 0) or row_tile % 128 == 0

    nr = _round_up(n, row_tile)           # padded rows (sublane axis)
    nl = _round_up(nr, 128)               # padded cols (lane axis) -> lane-dense output
    grid_rows = nr // row_tile

    f32 = jnp.float32
    p_row = jnp.pad(input0.astype(f32).reshape(1, n), ((0, 0), (0, nl - n)),
                    constant_values=0.5)
    t0f = target0.astype(f32)
    t0_row = jnp.pad(t0f.reshape(1, n), ((0, 0), (0, nl - n)))
    t0_col = jnp.pad(t0f.reshape(n, 1), ((0, nr - n), (0, 0)))
    logits = jnp.pad(input1.astype(f32), ((0, nr - n), (0, 0)))
    t1_col = jnp.pad(target1.astype(jnp.int32).reshape(n, 1), ((0, nl - n), (0, 0)))

    kernel = _make_pass1_kernel(n, c, nl, row_tile)
    sw_raw, stats = pl.pallas_call(
        kernel,
        out_shape=(jax.ShapeDtypeStruct((nr, nl), f32),
                   jax.ShapeDtypeStruct((1, 128), f32)),
        grid=(grid_rows,),
        in_specs=[
            pl.BlockSpec((1, nl), lambda i: (0, 0)),           # input0, row layout (all)
            pl.BlockSpec((1, nl), lambda i: (0, 0)),           # target0, row layout (all)
            pl.BlockSpec((row_tile, 1), lambda i: (i, 0)),     # target0, column tile
            pl.BlockSpec((row_tile, c), lambda i: (i, 0)),     # input1 logits tile
            pl.BlockSpec((nl, 1), lambda i: (0, 0)),           # target1, all samples (i32)
        ],
        out_specs=(
            pl.BlockSpec((row_tile, nl), lambda i: (i, 0)),    # un-normalized sample_weight
            pl.BlockSpec((1, 128), lambda i: (0, 0)),          # resident stats accumulator
        ),
        compiler_params=pltpu.CompilerParams(
            dimension_semantics=("arbitrary",),                # stats block carried across axis
            vmem_limit_bytes=VMEM_LIMIT_BYTES),
    )(p_row, t0_row, t0_col, logits, t1_col)

    loss1 = stats[0, 0]
    ce_sum = stats[0, 1]
    n_sel = stats[0, 2]     # NOTE: like PyTorch, NaN results if no sample has target0 > 0
    sum_w = stats[0, 3]
    loss = loss1 + ALPHA * ce_sum / n_sel
    scale = jnp.reshape(n_sel / sum_w, (1, 1)).astype(f32)

    sw = pl.pallas_call(
        _scale_kernel,
        out_shape=jax.ShapeDtypeStruct((nr, nl), f32),
        grid=(grid_rows,),
        in_specs=[
            pl.BlockSpec(memory_space=pltpu.MemorySpace.SMEM),  # scalar scale = n_sel / sum_w
            pl.BlockSpec((row_tile, nl), lambda i: (i, 0)),
        ],
        out_specs=pl.BlockSpec((row_tile, nl), lambda i: (i, 0)),
        input_output_aliases={1: 0},                            # scale sw_raw in place
        compiler_params=pltpu.CompilerParams(
            dimension_semantics=("parallel",),                  # v7x: split tiles across TCs
            vmem_limit_bytes=VMEM_LIMIT_BYTES),
    )(scale, sw_raw)

    return loss, sw


if __name__ == "__main__":
    key = jax.random.PRNGKey(0)
    N, C = 16, 8
    k0, k1, k2, k3, k4 = jax.random.split(key, 5)

    input0 = jax.nn.sigmoid(jax.random.normal(k0, (N,)))          # click probabilities
    input1 = jax.random.normal(k1, (N, C))                        # conversion logits
    input_final = jax.random.normal(k2, (N, C))                   # input[-1]; 'united' mode only
    target0 = jax.random.bernoulli(k3, 0.6, (N,)).astype(jnp.int32)
    target0 = target0.at[0].set(1)                                # guarantee >= 1 positive
    target1 = jax.random.randint(k4, (N,), 0, C)
    target = jnp.stack([target0, target1], axis=1)                # (N, 2) like the torch target

    loss, sw_padded = united_weighted_loss_sum_ctr(
        input0, input1, target[:, 0], target[:, 1], row_tile=8)   # row_tile=8 -> 2 grid steps
    jax.block_until_ready((loss, sw_padded))

    # ---- pure NumPy reference reproducing the PyTorch semantics ----
    i0 = np.asarray(input0, np.float64)
    i1 = np.asarray(input1, np.float64)
    # the kernel feeds the MXU bf16 logits for the g-gather; mirror that rounding here
    i1_bf = np.asarray(
        jnp.asarray(input1, jnp.float32).astype(jnp.bfloat16).astype(jnp.float32), np.float64)
    t0 = np.asarray(target0, np.float64)
    t1 = np.asarray(target1)
    sel = t0 > 0

    def np_bce(p, t):
        return -(t * np.maximum(np.log(p), -100.0)
                 + (1 - t) * np.maximum(np.log(1 - p), -100.0))

    loss1_ref = np_bce(i0, t0).mean()
    i1f, t1f = i1[sel], t1[sel]
    mx = i1f.max(-1, keepdims=True)
    lse = np.log(np.exp(i1f - mx).sum(-1)) + mx[:, 0]
    ce = lse - i1f[np.arange(len(t1f)), t1f]
    loss2_ref = ce.mean()
    loss_ref = loss1_ref + ALPHA * loss2_ref

    bce_click = np_bce(i0[sel], t0[sel])
    sw_ref = 1.0 - i1_bf[sel][:, t1f] + OFFSET + CTR_WEIGHT * bce_click   # (M, M)
    sw_ref = sw_ref / sw_ref.sum() * len(t1f)

    idx = np.nonzero(sel)[0]
    sw_kernel = np.asarray(sw_padded)[:N, :N][np.ix_(idx, idx)]

    assert np.allclose(float(loss), loss_ref, rtol=1e-4, atol=1e-4), (float(loss), loss_ref)
    assert np.allclose(sw_kernel, sw_ref, rtol=1e-4, atol=1e-4)
    print("KERNEL_OK")
</pallas_src>

<mosaic_0001>
module attributes {stable_mosaic.version = 11 : i64} {
  func.func @_scale_kernel(%arg0: i32, %arg1: memref<1x1xf32, #tpu.memory_space<smem>>, %arg2: memref<8x128xf32, #tpu.memory_space<vmem>>, %arg3: memref<8x128xf32, #tpu.memory_space<vmem>>) attributes {dimension_semantics = [#tpu.dimension_semantics<parallel>], iteration_bounds = array<i64: 2>, scalar_prefetch = 0 : i64, scratch_operands = 0 : i64, tpu.core_type = #tpu.core_type<tc>, window_params = [{transform_indices = @transform_0, window_bounds = array<i64: 1, 1>}, {transform_indices = @transform_1, window_bounds = array<i64: 8, 128>}, {transform_indices = @transform_2, window_bounds = array<i64: 8, 128>}]} {
    %c0 = arith.constant 0 : index
    %c0_0 = arith.constant 0 : index
    %0 = vector.load %arg2[%c0, %c0_0] : memref<8x128xf32, #tpu.memory_space<vmem>>, vector<8x128xf32>
    %c0_1 = arith.constant 0 : index
    %c0_2 = arith.constant 0 : index
    %1 = memref.load %arg1[%c0_1, %c0_2] : memref<1x1xf32, #tpu.memory_space<smem>>
    %2 = vector.broadcast %1 : f32 to vector<8x128xf32>
    %3 = arith.mulf %0, %2 : vector<8x128xf32>
    %c0_3 = arith.constant 0 : index
    %c0_4 = arith.constant 0 : index
    %4 = vector.load %arg3[%c0_3, %c0_4] : memref<8x128xf32, #tpu.memory_space<vmem>>, vector<8x128xf32>
    tpu.vector_store %arg3[%c0_3, %c0_4], %3 {strides = array<i32>} : memref<8x128xf32, #tpu.memory_space<vmem>>, vector<8x128xf32>,
    return
  }
  func.func @transform_0(%arg0: i32) -> (i32, i32) {
    %c0_i32 = arith.constant 0 : i32
    %c0_i32_0 = arith.constant 0 : i32
    %c0_i32_1 = arith.constant 0 : i32
    return %c0_i32, %c0_i32_0 : i32, i32
  }
  func.func @transform_1(%arg0: i32) -> (i32, i32) {
    %c0_i32 = arith.constant 0 : i32
    %c0_i32_0 = arith.constant 0 : i32
    return %arg0, %c0_i32 : i32, i32
  }
  func.func @transform_2(%arg0: i32) -> (i32, i32) {
    %c0_i32 = arith.constant 0 : i32
    %c0_i32_0 = arith.constant 0 : i32
    return %arg0, %c0_i32 : i32, i32
  }
}

module attributes {stable_mosaic.version = 11 : i64} {
  func.func @kernel(%arg0: i32, %arg1: memref<1x128xf32, #tpu.memory_space<vmem>>, %arg2: memref<1x128xf32, #tpu.memory_space<vmem>>, %arg3: memref<8x1xf32, #tpu.memory_space<vmem>>, %arg4: memref<8x8xf32, #tpu.memory_space<vmem>>, %arg5: memref<128x1xi32, #tpu.memory_space<vmem>>, %arg6: memref<8x128xf32, #tpu.memory_space<vmem>>, %arg7: memref<1x128xf32, #tpu.memory_space<vmem>>) attributes {dimension_semantics = [#tpu.dimension_semantics<arbitrary>], iteration_bounds = array<i64: 2>, scalar_prefetch = 0 : i64, scratch_operands = 0 : i64, tpu.core_type = #tpu.core_type<tc>, window_params = [{pipeline_mode = #tpu.pipeline_mode<synchronous>, transform_indices = @transform_0, window_bounds = array<i64: 1, 128>}, {pipeline_mode = #tpu.pipeline_mode<synchronous>, transform_indices = @transform_1, window_bounds = array<i64: 1, 128>}, {transform_indices = @transform_2, window_bounds = array<i64: 8, 1>}, {transform_indices = @transform_3, window_bounds = array<i64: 8, 8>}, {pipeline_mode = #tpu.pipeline_mode<synchronous>, transform_indices = @transform_4, window_bounds = array<i64: 128, 1>}, {transform_indices = @transform_5, window_bounds = array<i64: 8, 128>}, {pipeline_mode = #tpu.pipeline_mode<synchronous>, transform_indices = @transform_6, window_bounds = array<i64: 1, 128>}]} {
    %c0 = arith.constant 0 : index
    %c0_0 = arith.constant 0 : index
    %0 = vector.load %arg1[%c0, %c0_0] : memref<1x128xf32, #tpu.memory_space<vmem>>, vector<1x128xf32>
    %c0_1 = arith.constant 0 : index
    %c0_2 = arith.constant 0 : index
    %1 = vector.load %arg2[%c0_1, %c0_2] : memref<1x128xf32, #tpu.memory_space<vmem>>, vector<1x128xf32>
    %c0_3 = arith.constant 0 : index
    %c0_4 = arith.constant 0 : index
    %2 = vector.load %arg3[%c0_3, %c0_4] : memref<8x1xf32, #tpu.memory_space<vmem>>, vector<8x1xf32>
    %c0_5 = arith.constant 0 : index
    %c0_6 = arith.constant 0 : index
    %3 = vector.load %arg4[%c0_5, %c0_6] : memref<8x8xf32, #tpu.memory_space<vmem>>, vector<8x8xf32>
    %c0_7 = arith.constant 0 : index
    %c0_8 = arith.constant 0 : index
    %4 = vector.load %arg5[%c0_7, %c0_8] : memref<128x1xi32, #tpu.memory_space<vmem>>, vector<128x1xi32>
    %5 = math.log %0 : vector<1x128xf32>
    %cst = arith.constant -1.000000e+02 : f32
    %6 = vector.broadcast %cst : f32 to vector<1x128xf32>
    %7 = arith.maximumf %5, %6 : vector<1x128xf32>
    %cst_9 = arith.constant 1.000000e+00 : f32
    %8 = vector.broadcast %cst_9 : f32 to vector<1x128xf32>
    %9 = arith.subf %8, %0 : vector<1x128xf32>
    %10 = math.log %9 : vector<1x128xf32>
    %cst_10 = arith.constant -1.000000e+02 : f32
    %11 = vector.broadcast %cst_10 : f32 to vector<1x128xf32>
    %12 = arith.maximumf %10, %11 : vector<1x128xf32>
    %13 = arith.mulf %1, %7 : vector<1x128xf32>
    %cst_11 = arith.constant 1.000000e+00 : f32
    %14 = vector.broadcast %cst_11 : f32 to vector<1x128xf32>
    %15 = arith.subf %14, %1 : vector<1x128xf32>
    %16 = arith.mulf %15, %12 : vector<1x128xf32>
    %17 = arith.addf %13, %16 : vector<1x128xf32>
    %cst_12 = arith.constant 0.000000e+00 : f32
    %18 = vector.broadcast %cst_12 : f32 to vector<1x128xf32>
    %19 = arith.subf %18, %17 : vector<1x128xf32>
    %cst_13 = arith.constant 0.000000e+00 : f32
    %20 = vector.broadcast %cst_13 : f32 to vector<1x128xf32>
    %21 = arith.cmpf ogt, %1, %20 : vector<1x128xf32>
    %22 = arith.extui %21 : vector<1x128xi1> to vector<1x128xi32>
    %23 = arith.sitofp %22 : vector<1x128xi32> to vector<1x128xf32>
    %cst_14 = arith.constant 0.000000e+00 : f32
    %24 = vector.broadcast %cst_14 : f32 to vector<8x1xf32>
    %25 = arith.cmpf ogt, %2, %24 : vector<8x1xf32>
    %26 = arith.extui %25 : vector<8x1xi1> to vector<8x1xi32>
    %27 = arith.sitofp %26 : vector<8x1xi32> to vector<8x1xf32>
    %28 = tpu.iota {dimensions = array<i32: 1>} : vector<1x128xi32>
    %c16_i32 = arith.constant 16 : i32
    %29 = vector.broadcast %c16_i32 : i32 to vector<1x128xi32>
    %30 = arith.cmpi slt, %28, %29 : vector<1x128xi32>
    %31 = arith.extui %30 : vector<1x128xi1> to vector<1x128xi32>
    %32 = arith.sitofp %31 : vector<1x128xi32> to vector<1x128xf32>
    %c8_i32 = arith.constant 8 : i32
    %33 = arith.muli %arg0, %c8_i32 : i32
    %34 = tpu.assume_multiple %33, 8 : i32
    %35 = arith.index_cast %34 : i32 to index
    %c0_15 = arith.constant 0 : index
    %36 = vector.load %arg5[%35, %c0_15] : memref<128x1xi32, #tpu.memory_space<vmem>>, vector<8x1xi32>
    %37 = tpu.iota {dimensions = array<i32: 1>} : vector<8x8xi32>
    %38 = vector.broadcast %36 : vector<8x1xi32> to vector<8x8xi32>
    %39 = arith.cmpi eq, %37, %38 : vector<8x8xi32>
    %40 = arith.extui %39 : vector<8x8xi1> to vector<8x8xi32>
    %41 = arith.sitofp %40 : vector<8x8xi32> to vector<8x8xf32>
    %cst_16 = arith.constant dense<0xFF800000> : vector<8xf32>
    %42 = vector.multi_reduction <maximumf>, %3, %cst_16 [1] : vector<8x8xf32> to vector<8xf32>
    %43 = vector.shape_cast %42 : vector<8xf32> to vector<8x1xf32>
    %44 = vector.broadcast %43 : vector<8x1xf32> to vector<8x8xf32>
    %45 = arith.subf %3, %44 : vector<8x8xf32>
    %46 = math.exp %45 : vector<8x8xf32>
    %cst_17 = arith.constant dense<0.000000e+00> : vector<8xf32>
    %47 = vector.multi_reduction <add>, %46, %cst_17 [1] : vector<8x8xf32> to vector<8xf32>
    %48 = vector.shape_cast %47 : vector<8xf32> to vector<8x1xf32>
    %49 = math.log %48 : vector<8x1xf32>
    %50 = arith.addf %43, %49 : vector<8x1xf32>
    %51 = arith.mulf %3, %41 : vector<8x8xf32>
    %cst_18 = arith.constant dense<0.000000e+00> : vector<8xf32>
    %52 = vector.multi_reduction <add>, %51, %cst_18 [1] : vector<8x8xf32> to vector<8xf32>
    %53 = vector.shape_cast %52 : vector<8xf32> to vector<8x1xf32>
    %54 = arith.subf %50, %53 : vector<8x1xf32>
    %55 = arith.mulf %54, %27 : vector<8x1xf32>
    %56 = vector.shape_cast %55 : vector<8x1xf32> to vector<1x8x1xf32>
    %cst_19 = arith.constant dense<0.000000e+00> : vector<1xf32>
    %57 = vector.multi_reduction <add>, %56, %cst_19 [1, 2] : vector<1x8x1xf32> to vector<1xf32>
    %58 = vector.shape_cast %57 : vector<1xf32> to vector<1x1x1xf32>
    %59 = vector.extract %58[0, 0, 0] : f32 from vector<1x1x1xf32>
    %60 = tpu.iota {dimensions = array<i32: 1>} : vector<128x8xi32>
    %61 = vector.broadcast %4 : vector<128x1xi32> to vector<128x8xi32>
    %62 = arith.cmpi eq, %60, %61 : vector<128x8xi32>
    %63 = arith.extui %62 : vector<128x8xi1> to vector<128x8xi32>
    %64 = arith.sitofp %63 : vector<128x8xi32> to vector<128x8xf32>
    %65 = arith.truncf %64 : vector<128x8xf32> to vector<128x8xbf16>
    %66 = arith.truncf %3 : vector<8x8xf32> to vector<8x8xbf16>
    %cst_20 = arith.constant dense<0.000000e+00> : vector<8x128xf32>
    %67 = tpu.matmul %66, %65, %cst_20 {dimension_numbers = #tpu.dot_dimension_numbers<[1], [1], [0], [0], [0, 0, 1, 0], [], []>} : vector<8x8xbf16>, vector<128x8xbf16>, vector<8x128xf32> -> vector<8x128xf32>
    %cst_21 = arith.constant 1.000000e+00 : f32
    %68 = vector.broadcast %cst_21 : f32 to vector<8x128xf32>
    %69 = arith.subf %68, %67 : vector<8x128xf32>
    %cst_22 = arith.constant 0.000000e+00 : f32
    %70 = vector.broadcast %cst_22 : f32 to vector<8x128xf32>
    %71 = arith.addf %69, %70 : vector<8x128xf32>
    %cst_23 = arith.constant 1.000000e+00 : f32
    %72 = vector.broadcast %cst_23 : f32 to vector<1x128xf32>
    %73 = arith.mulf %72, %19 : vector<1x128xf32>
    %74 = vector.broadcast %73 : vector<1x128xf32> to vector<8x128xf32>
    %75 = arith.addf %71, %74 : vector<8x128xf32>
    %76 = vector.broadcast %27 : vector<8x1xf32> to vector<8x128xf32>
    %77 = arith.mulf %75, %76 : vector<8x128xf32>
    %78 = vector.broadcast %23 : vector<1x128xf32> to vector<8x128xf32>
    %79 = arith.mulf %77, %78 : vector<8x128xf32>
    %c0_24 = arith.constant 0 : index
    %c0_25 = arith.constant 0 : index
    %80 = vector.load %arg6[%c0_24, %c0_25] : memref<8x128xf32, #tpu.memory_space<vmem>>, vector<8x128xf32>
    tpu.vector_store %arg6[%c0_24, %c0_25], %79 {strides = array<i32>} : memref<8x128xf32, #tpu.memory_space<vmem>>, vector<8x128xf32>,
    %81 = vector.shape_cast %79 : vector<8x128xf32> to vector<1x8x128xf32>
    %cst_26 = arith.constant dense<0.000000e+00> : vector<1xf32>
    %82 = vector.multi_reduction <add>, %81, %cst_26 [1, 2] : vector<1x8x128xf32> to vector<1xf32>
    %83 = vector.shape_cast %82 : vector<1xf32> to vector<1x1x1xf32>
    %84 = vector.extract %83[0, 0, 0] : f32 from vector<1x1x1xf32>
    %85 = tpu.iota {dimensions = array<i32: 1>} : vector<1x128xi32>
    %c0_i32 = arith.constant 0 : i32
    %86 = arith.cmpi eq, %arg0, %c0_i32 : i32
    %87 = arith.extui %86 : i1 to i32
    %c0_i32_27 = arith.constant 0 : i32
    %88 = arith.cmpi ne, %87, %c0_i32_27 : i32
    scf.if %88 {
      %103 = arith.mulf %19, %32 : vector<1x128xf32>
      %104 = vector.shape_cast %103 : vector<1x128xf32> to vector<1x1x128xf32>
      %cst_34 = arith.constant dense<0.000000e+00> : vector<1xf32>
      %105 = vector.multi_reduction <add>, %104, %cst_34 [1, 2] : vector<1x1x128xf32> to vector<1xf32>
      %106 = vector.shape_cast %105 : vector<1xf32> to vector<1x1x1xf32>
      %107 = vector.extract %106[0, 0, 0] : f32 from vector<1x1x1xf32>
      %cst_35 = arith.constant 6.250000e-02 : f32
      %108 = arith.mulf %107, %cst_35 : f32
      %109 = vector.shape_cast %23 : vector<1x128xf32> to vector<1x1x128xf32>
      %cst_36 = arith.constant dense<0.000000e+00> : vector<1xf32>
      %110 = vector.multi_reduction <add>, %109, %cst_36 [1, 2] : vector<1x1x128xf32> to vector<1xf32>
      %111 = vector.shape_cast %110 : vector<1xf32> to vector<1x1x1xf32>
      %112 = vector.extract %111[0, 0, 0] : f32 from vector<1x1x1xf32>
      %c0_i32_37 = arith.constant 0 : i32
      %113 = vector.broadcast %c0_i32_37 : i32 to vector<1x128xi32>
      %114 = arith.cmpi eq, %85, %113 : vector<1x128xi32>
      %cst_38 = arith.constant 0.000000e+00 : f32
      %115 = vector.broadcast %108 : f32 to vector<1x128xf32>
      %116 = vector.broadcast %cst_38 : f32 to vector<1x128xf32>
      %117 = arith.select %114, %115, %116 : vector<1x128xi1>, vector<1x128xf32>
      %c2_i32 = arith.constant 2 : i32
      %118 = vector.broadcast %c2_i32 : i32 to vector<1x128xi32>
      %119 = arith.cmpi eq, %85, %118 : vector<1x128xi32>
      %cst_39 = arith.constant 0.000000e+00 : f32
      %120 = vector.broadcast %112 : f32 to vector<1x128xf32>
      %121 = vector.broadcast %cst_39 : f32 to vector<1x128xf32>
      %122 = arith.select %119, %120, %121 : vector<1x128xi1>, vector<1x128xf32>
      %123 = arith.addf %117, %122 : vector<1x128xf32>
      %c0_40 = arith.constant 0 : index
      %c0_41 = arith.constant 0 : index
      %124 = vector.load %arg7[%c0_40, %c0_41] : memref<1x128xf32, #tpu.memory_space<vmem>>, vector<1x128xf32>
      tpu.vector_store %arg7[%c0_40, %c0_41], %123 {strides = array<i32>} : memref<1x128xf32, #tpu.memory_space<vmem>>, vector<1x128xf32>,
    } else {
    }
    %c0_28 = arith.constant 0 : index
    %c0_29 = arith.constant 0 : index
    %89 = vector.load %arg7[%c0_28, %c0_29] : memref<1x128xf32, #tpu.memory_space<vmem>>, vector<1x128xf32>
    %c1_i32 = arith.constant 1 : i32
    %90 = vector.broadcast %c1_i32 : i32 to vector<1x128xi32>
    %91 = arith.cmpi eq, %85, %90 : vector<1x128xi32>
    %cst_30 = arith.constant 0.000000e+00 : f32
    %92 = vector.broadcast %59 : f32 to vector<1x128xf32>
    %93 = vector.broadcast %cst_30 : f32 to vector<1x128xf32>
    %94 = arith.select %91, %92, %93 : vector<1x128xi1>, vector<1x128xf32>
    %c3_i32 = arith.constant 3 : i32
    %95 = vector.broadcast %c3_i32 : i32 to vector<1x128xi32>
    %96 = arith.cmpi eq, %85, %95 : vector<1x128xi32>
    %cst_31 = arith.constant 0.000000e+00 : f32
    %97 = vector.broadcast %84 : f32 to vector<1x128xf32>
    %98 = vector.broadcast %cst_31 : f32 to vector<1x128xf32>
    %99 = arith.select %96, %97, %98 : vector<1x128xi1>, vector<1x128xf32>
    %100 = arith.addf %94, %99 : vector<1x128xf32>
    %101 = arith.addf %89, %100 : vector<1x128xf32>
    %c0_32 = arith.constant 0 : index
    %c0_33 = arith.constant 0 : index
    %102 = vector.load %arg7[%c0_32, %c0_33] : memref<1x128xf32, #tpu.memory_space<vmem>>, vector<1x128xf32>
    tpu.vector_store %arg7[%c0_32, %c0_33], %101 {strides = array<i32>} : memref<1x128xf32, #tpu.memory_space<vmem>>, vector<1x128xf32>,
    return
  }
  func.func @transform_0(%arg0: i32) -> (i32, i32) {
    %c0_i32 = arith.constant 0 : i32
    %c0_i32_0 = arith.constant 0 : i32
    %c0_i32_1 = arith.constant 0 : i32
    return %c0_i32, %c0_i32_0 : i32, i32
  }
  func.func @transform_1(%arg0: i32) -> (i32, i32) {
    %c0_i32 = arith.constant 0 : i32
    %c0_i32_0 = arith.constant 0 : i32
    %c0_i32_1 = arith.constant 0 : i32
    return %c0_i32, %c0_i32_0 : i32, i32
  }
  func.func @transform_2(%arg0: i32) -> (i32, i32) {
    %c0_i32 = arith.constant 0 : i32
    %c0_i32_0 = arith.constant 0 : i32
    return %arg0, %c0_i32 : i32, i32
  }
  func.func @transform_3(%arg0: i32) -> (i32, i32) {
    %c0_i32 = arith.constant 0 : i32
    %c0_i32_0 = arith.constant 0 : i32
    return %arg0, %c0_i32 : i32, i32
  }
  func.func @transform_4(%arg0: i32) -> (i32, i32) {
    %c0_i32 = arith.constant 0 : i32
    %c0_i32_0 = arith.constant 0 : i32
    %c0_i32_1 = arith.constant 0 : i32
    return %c0_i32, %c0_i32_0 : i32, i32
  }
  func.func @transform_5(%arg0: i32) -> (i32, i32) {
    %c0_i32 = arith.constant 0 : i32
    %c0_i32_0 = arith.constant 0 : i32
    return %arg0, %c0_i32 : i32, i32
  }
  func.func @transform_6(%arg0: i32) -> (i32, i32) {
    %c0_i32 = arith.constant 0 : i32
    %c0_i32_0 = arith.constant 0 : i32
    %c0_i32_1 = arith.constant 0 : i32
    return %c0_i32, %c0_i32_0 : i32, i32
  }
}

</mosaic_0001>

<bundles_post_ra>
// kernel: united_weighted_loss_sum_ctr.3
= control target key start
LH: loop header
LB: loop body
LE: loop exit
PB: predicated region body
PF: predicated region fallthrough
CT: control target
= control target key end

     0   :  { %s219_s11 = smov 0   ;;  %s247_s0 = inlined_call_operand.<no memory space> [shape: f32[1,1], index: 0, kind: input, shape index: {}]   ;;  %s248_s1 = inlined_call_operand.vmem [shape: f32[16,128], index: 1, kind: input, shape index: {}, may-alias: {1,2}]   ;;  %s249_s2 = inlined_call_operand.vmem [shape: f32[16,128], index: 2, kind: output, shape index: {}, may-alias: {1,2}]  }
   0x1   :  { %7 = sst [smem:[#allocation2]] %s247_s0 }
   0x2 LB: > { %s198_s12 = sadd.s32 4294967295, %s221_s11   ;;  %p202_p0 = scmp.ge.s32.totalorder %s221_s11, 1  ;;  %s221_s11 = sphi %s219_s11, %s13_s11  }
   0x3   : > { %p112_p1 = scmp.lt.s32.totalorder %s221_s11, 3 }
   0x5   : > { %p113_p2 = pnand %p202_p0, %p112_p1 }
   0x6   : > { %p132_p3 = scmp.lt.s32.totalorder (!%p113_p2), %s198_s12, 1  ;;  %s141_s13 = sld [smem:[#allocation2]] (!%p113_p2) }
   0x7   : > { %116 = sbr.rel (%p113_p2) target bundleno = 19 (0x13), region = 28 }
   0xc   : > { %s251_s12 = smov (!%p132_p3, %s198_s12), 1  ;;  %v142_v1 = vstv %s141_s13 }
   0xd   : > { %s203_s14 = sshll.u32 %s251_s12, 3 }
   0xe   : > { %s135_s17 = scalar_lea.vmem %s248_s1, %s203_s14  ;;  %s139_s0 = scalar_lea.vmem %s249_s2, %s203_s14 }
   0xf   : > { %v140_v0 = vld [vmem:[%s135_s17] sm:$0xff] }
  0x10   : > { %v143_v2 = vmul.f32 %v142_v1, %v140_v0 }
  0x12   : > { %144 = vst [vmem:[%s139_s0] sm:$0xff] %v143_v2 }
  0x13 PF: > { %s13_s11 = sadd.s32 1, %s221_s11  }
  0x14   : > { %p10_p4 = scmp.ge.s32.totalorder %s13_s11, 4  }
  0x16   :  { %12 = sbr.rel (!%p10_p4) target bundleno = 2 (0x2), region = 58 }

// kernel: united_weighted_loss_sum_ctr.2
= control target key start
LH: loop header
LB: loop body
LE: loop exit
PB: predicated region body
PF: predicated region fallthrough
CT: control target
= control target key end

     0   :  { %s740_s21 = smov 0   ;;  %s913_s0 = inlined_call_operand.vmem [shape: f32[1,128], index: 0, kind: input, shape index: {}]   ;;  %s914_s1 = inlined_call_operand.vmem [shape: f32[1,128], index: 1, kind: input, shape index: {}]   ;;  %s915_s2 = inlined_call_operand.vmem [shape: f32[16,1], index: 2, kind: input, shape index: {}]   ;;  %s916_s3 = inlined_call_operand.vmem [shape: f32[16,8], index: 3, kind: input, shape index: {}]   ;;  %s917_s4 = inlined_call_operand.vmem [shape: s32[128,1], index: 4, kind: input, shape index: {}]   ;;  %s918_s5 = inlined_call_operand.vmem [shape: f32[16,128], index: 5, kind: output, shape index: {0}]   ;;  %s919_s6 = inlined_call_operand.vmem [shape: f32[1,128], index: 6, kind: output, shape index: {1}]  }
   0x1 LB: > { %s746_s22 = sadd.s32 4294967295, %s701_s21   ;;  %p637_p0 = scmp.ge.s32.totalorder %s701_s21, 1  ;;  %s701_s21 = sphi %s740_s21, %s17_s21  }
   0x2   : > { %p218_p1 = scmp.lt.s32.totalorder %s701_s21, 3 }
   0x4   : > { %p219_p2 = pnand %p637_p0, %p218_p1 }
   0x5   : > { %s644_s7 = sshll.u32 (!%p219_p2), %s746_s22, 3  ;;  %p250_p3 = scmp.lt.s32.totalorder (!%p219_p2), %s746_s22, 1 }
   0x6   : > { %222 = sbr.rel (%p219_p2) target bundleno = 730 (0x2da), region = 40  ;;  %s306_s10 = scalar_lea.vmem (!%p219_p2), %s917_s4, %s644_s7 }
   0x7   : > { %p663_p4 = scmp.ne.s32.totalorder (!%p219_p2), %s746_s22, 0 }
   0xb   : > { %v280_v0 = vld [vmem:[%s917_s4 + $0x70] sm:$0xff]  ;;  %v278_v1 = vld [vmem:[%s917_s4 + $0x60] sm:$0xff]  ;;  %v703_v2 = vmov 0   ;;  %v281_v4 = vld [vmem:[%s917_s4 + $0x78] sm:$0xff]  ;;  %s251_s13 = scalar_select %p250_p3, %s746_s22, 1  ;;  %vm314_vm0 = vcmask 64512   ;;  %v300_v26 = vlaneseq }
   0xc   : > { %685 = vset.pattern.permute.xlu1 %v703_v2  ;;  %684 = vset.pattern.permute.xlu0 %v703_v2  ;;  %v276_v3 = vld [vmem:[%s917_s4 + $0x50] sm:$0xff]  ;;  %v279_v5 = vld [vmem:[%s917_s4 + $0x68] sm:$0xff]  ;;  %v277_v6 = vld [vmem:[%s917_s4 + $0x58] sm:$0xff]  ;;  %v704_v22 = vmov 0.0  }
   0xd   : > { %387 = vperm.xlu0 %684, %v280_v0   ;;  %381 = vperm.xlu1 %685, %v278_v1   ;;  %v275_v7 = vld [vmem:[%s917_s4 + $0x48] sm:$0xff]  ;;  %v274_v8 = vld [vmem:[%s917_s4 + $0x40] sm:$0xff]  ;;  %v272_v9 = vld [vmem:[%s917_s4 + $0x30] sm:$0xff]  ;;  %s804_s14 = sshll.u32 %s251_s13, 3  ;;  %v822_v30 = vand.u32 127, %v300_v26 }
   0xe   : > { %686 = vset.pattern.permute.xlu2 %v703_v2  ;;  %v273_v10 = vld [vmem:[%s917_s4 + $0x38] sm:$0xff]  ;;  %v270_v11 = vld [vmem:[%s917_s4 + $0x20] sm:$0xff]  ;;  %v271_v12 = vld [vmem:[%s917_s4 + $0x28] sm:$0xff]  ;;  %s257_s17 = scalar_lea.vmem %s916_s3, %s804_s14  ;;  %s253_s20 = scalar_lea.vmem %s915_s2, %s804_s14 }
   0xf   : > { %375 = vperm.xlu2 %686, %v276_v3   ;;  %v269_v13 = vld [vmem:[%s917_s4 + $0x18] sm:$0xff]  ;;  %v268_v14 = vld [vmem:[%s917_s4 + $0x10] sm:$0xff]  ;;  %v266_v15 = vld [vmem:[%s917_s4] sm:$0xff]  ;;  %s261_s29 = scalar_lea.vmem %s918_s5, %s804_s14 }
  0x10   : > { %v267_v16 = vld [vmem:[%s917_s4 + $0x8] sm:$0xff]  ;;  %v307_v17 = vld [vmem:[%s306_s10] sm:$0xff] }
  0x11   : > { %v810_v18 = vld [vmem:[%s257_s17] sm:$0xff] }
  0x12   : > { %v315_v19 = vsel %vm314_vm0, %v810_v18, -inf  ;;  %v264_v20 = vld [vmem:[%s253_s20] sm:$0xff] }
  0x13   : > { %vm297_vm1 = vcmp.gt.f32.partialorder %v264_v20, 0.0  ;;  %v262_v20 = vld [vmem:[%s913_s0] sm:$0x1] }
  0x14   : > { %v819_v23 = vsel %vm297_vm1, 1.0, %v704_v22 }
  0x15   : > { %390 = vperm.xlu0 %684, %v281_v4   ;;  %384 = vperm.xlu1 %685, %v279_v5  }
  0x17   : > { %378 = vperm.xlu2 %686, %v277_v6  }
  0x1d   : > { %372 = vperm.xlu1 %685, %v275_v7   ;;  %369 = vperm.xlu0 %684, %v274_v8  }
  0x1f   : > { %363 = vperm.xlu2 %686, %v272_v9  }
  0x25   : > { %366 = vperm.xlu0 %684, %v273_v10   ;;  %357 = vperm.xlu1 %685, %v270_v11  }
  0x27   : > { %360 = vperm.xlu2 %686, %v271_v12  }
  0x2d   : > { %354 = vperm.xlu1 %685, %v269_v13   ;;  %351 = vperm.xlu0 %684, %v268_v14   ;;  %v448_v13 = vpack.c.bf16 %v810_v18, %v810_v18 }
  0x2f   : > { %345 = vperm.xlu2 %686, %v266_v15  }
  0x35   : > { %348 = vperm.xlu0 %684, %v267_v16  }
  0x37   : > { %309 = vperm.xlu2 %686, %v307_v17  }
  0x57   : > { %316 = vmax.xlane.f32.xlu1 %v315_v19 }
  0x69   : > { %v376_v21 = vpop.permute.xlu2 %375 }
  0x6a   : > { %vm402_vm6 = vcmp.eq.s32.totalorder %v822_v30, %v376_v21  ;;  %v285_v21 = vsub.f32 1.0, %v262_v20 }
  0x6b   : > { %v656_v42 = vsel %vm402_vm6, 1.0, %v704_v22 }
  0x70   : > { %497 = vperm.xlu1 %685, %v819_v23  }
  0x71   : > { %v379_v24 = vpop.permute.xlu2 %378 }
  0x72   : > { %vm403_vm7 = vcmp.eq.s32.totalorder %v822_v30, %v379_v24 }
  0x73   : > { %v657_v43 = vsel %vm403_vm7, 1.0, %v704_v22 }
  0x74   : > { %v445_v48 = vpack.c.bf16 %v657_v43, %v656_v42 }
  0x76   : > { %v468_v51 = vsel %vm314_vm0, %v445_v48, 0 }
  0x79   : > { %v364_v25 = vpop.permute.xlu2 %363 }
  0x7a   : > { %vm398_vm11 = vcmp.eq.s32.totalorder %v822_v30, %v364_v25 }
  0x7b   : > { %v652_v57 = vsel %vm398_vm11, 1.0, %v704_v22 }
  0x7f   : > { %v388_v27 = vpop.permute.xlu0 %387  ;;  %v382_v28 = vpop.permute.xlu1 %381 }
  0x80   : > { %vm406_vm2 = vcmp.eq.s32.totalorder %v822_v30, %v388_v27  ;;  %vm404_vm5 = vcmp.eq.s32.totalorder %v822_v30, %v382_v28 }
  0x81   : > { %v361_v29 = vpop.permute.xlu2 %360  ;;  %v660_v31 = vsel %vm406_vm2, 1.0, %v704_v22  ;;  %v658_v39 = vsel %vm404_vm5, 1.0, %v704_v22  ;;  %vm302_vm5 = vcmp.lt.s32.totalorder %v822_v30, 16 }
  0x82   : > { %vm397_vm13 = vcmp.eq.s32.totalorder %v822_v30, %v361_v29 }
  0x83   : > { %v651_v62 = vsel %vm397_vm13, 1.0, %v704_v22 }
  0x87   : > { %v391_v32 = vpop.permute.xlu0 %390  ;;  %v385_v33 = vpop.permute.xlu1 %384 }
  0x88   : > { %vm407_vm3 = vcmp.eq.s32.totalorder %v822_v30, %v391_v32  ;;  %vm405_vm4 = vcmp.eq.s32.totalorder %v822_v30, %v385_v33 }
  0x89   : > { %v661_v34 = vsel %vm407_vm3, 1.0, %v704_v22  ;;  %v828_v35 = vpop.permute.xlu2 %345  ;;  %v659_v38 = vsel %vm405_vm4, 1.0, %v704_v22  ;;  %vm333_vm4 = vcmask 7168  }
  0x8a   : > { %v447_v36 = vpack.c.bf16 %v661_v34, %v660_v31  ;;  %v446_v40 = vpack.c.bf16 %v659_v38, %v658_v39  ;;  %vm392_vm3 = vcmp.eq.s32.totalorder %v822_v30, %v828_v35 }
  0x8b   : > { %v646_v10 = vsel %vm392_vm3, 1.0, %v704_v22 }
  0x8c   : > { %v474_v37 = vsel %vm314_vm0, %v447_v36, 0  ;;  %v471_v45 = vsel %vm314_vm0, %v446_v40, 0 }
  0x8d   : > { %476 = vmatpush.bf16.xpose.msra.mxu0 %v474_v37 }
  0x8f   : > { %v370_v47 = vpop.permute.xlu0 %369  ;;  %v373_v50 = vpop.permute.xlu1 %372 }
  0x90   : > { %vm401_vm9 = vcmp.eq.s32.totalorder %v822_v30, %v373_v50  ;;  %vm400_vm10 = vcmp.eq.s32.totalorder %v822_v30, %v370_v47 }
  0x91   : > { %v310_v41 = vpop.permute.xlu2 %309  ;;  %v655_v52 = vsel %vm401_vm9, 1.0, %v704_v22  ;;  %v654_v53 = vsel %vm400_vm10, 1.0, %v704_v22 }
  0x92   : > { %vm311_vm8 = vcmp.eq.s32.totalorder %v822_v30, %v310_v41  ;;  %v444_v55 = vpack.c.bf16 %v655_v52, %v654_v53 }
  0x93   : > { %v645_v44 = vsel %vm311_vm8, 1.0, %v704_v22 }
  0x94   : > { %v327_v46 = vmul.f32 %v645_v44, %v810_v18  ;;  %v465_v56 = vsel %vm314_vm0, %v444_v55, 0 }
  0x95   : > { %477 = vmatpush.bf16.xpose.msra.mxu0 %v471_v45 }
  0x96   : > { %v328_v49 = vsel %vm314_vm0, %v327_v46, 0.0 }
  0x97   : > { %329 = vadd.xlane.f32.xlu2 %v328_v49  ;;  %v367_v54 = vpop.permute.xlu0 %366  ;;  %v358_v59 = vpop.permute.xlu1 %357 }
  0x98   : > { %vm399_vm12 = vcmp.eq.s32.totalorder %v822_v30, %v367_v54  ;;  %vm396_vm14 = vcmp.eq.s32.totalorder %v822_v30, %v358_v59  ;;  %v643_v54 = vsel %vm302_vm5, 1.0, %v704_v22 }
  0x99   : > { %v653_v58 = vsel %vm399_vm12, 1.0, %v704_v22  ;;  %v650_v63 = vsel %vm396_vm14, 1.0, %v704_v22 }
  0x9a   : > { %v443_v60 = vpack.c.bf16 %v653_v58, %v652_v57  ;;  %v442_v2 = vpack.c.bf16 %v651_v62, %v650_v63 }
  0x9c   : > { %v462_v61 = vsel %vm314_vm0, %v443_v60, 0  ;;  %v459_v3 = vsel %vm314_vm0, %v442_v2, 0 }
  0x9d   : > { %478 = vmatpush.bf16.xpose.msra.mxu0 %v468_v51 }
  0x9f   : > { %v352_v0 = vpop.permute.xlu0 %351  ;;  %v355_v1 = vpop.permute.xlu1 %354 }
  0xa0   : > { %vm395_vm15 = vcmp.eq.s32.totalorder %v822_v30, %v355_v1  ;;  %vm394_vm1 = vcmp.eq.s32.totalorder %v822_v30, %v352_v0 }
  0xa1   : > { %v649_v4 = vsel %vm395_vm15, 1.0, %v704_v22  ;;  %v648_v5 = vsel %vm394_vm1, 1.0, %v704_v22 }
  0xa2   : > { %v441_v7 = vpack.c.bf16 %v649_v4, %v648_v5 }
  0xa4   : > { %v456_v8 = vsel %vm314_vm0, %v441_v7, 0 }
  0xa5   : > { %479 = vmatpush.bf16.xpose.msra.mxu0 %v465_v56 }
  0xa7   : > { %v349_v6 = vpop.permute.xlu0 %348 }
  0xa8   : > { %vm393_vm2 = vcmp.eq.s32.totalorder %v822_v30, %v349_v6 }
  0xa9   : > { %v647_v9 = vsel %vm393_vm2, 1.0, %v704_v22 }
  0xaa   : > { %v440_v11 = vpack.c.bf16 %v647_v9, %v646_v10 }
  0xac   : > { %v453_v12 = vsel %vm314_vm0, %v440_v11, 0 }
  0xad   : > { %480 = vmatpush.bf16.xpose.msra.mxu0 %v462_v61 }
  0xb5   : > { %481 = vmatpush.bf16.xpose.msra.mxu0 %v459_v3 }
  0xbd   : > { %482 = vmatpush.bf16.xpose.msra.mxu0 %v456_v8 }
  0xc5   : > { %483 = vmatpush.bf16.xpose.msra.mxu0 %v453_v12 }
  0xca   : > { %v317_v14 = vpop.xlane.xlu1 %316 }
  0xcb   : > { %v318_v15 = vsub.f32 %v810_v18, %v317_v14  ;;  %v263_v18 = vld [vmem:[%s914_s1] sm:$0x1] }
  0xcc   : > { %662 = vmatmul.msk.bf16.vlgmr.msra.gmra.mxu0 %vm314_vm0, %v448_v13  ;;  %v290_v31 = vsub.f32 1.0, %v263_v18 }
  0xcd   : > { %v319_v16 = vmul.f32 1.442695, %v318_v15 }
  0xcf   : > { %687 = vpow2.f32 %v319_v16 }
  0xd0   : > { %689 = vlog2.f32 %v262_v20 }
  0xd1   : > { %691 = vlog2.f32 %v285_v21 }
  0xd5   : > { %v688_v17 = vpop.eup %687 }
  0xd6   : > { %v321_v19 = vsel %vm314_vm0, %v688_v17, 0.0  ;;  %v690_v24 = vpop.eup %689  ;;  %vm294_vm0 = vcmp.gt.f32.partialorder %v263_v18, 0.0 }
  0xd7   : > { %322 = vadd.xlane.f32.xlu0 %v321_v19  ;;  %v692_v25 = vpop.eup %691  ;;  %v283_v26 = vmul.f32 0.6931472, %v690_v24  ;;  %v641_v38 = vsel %vm294_vm0, 1.0, %v704_v22 }
  0xd8   : > { %v287_v27 = vmul.f32 0.6931472, %v692_v25  ;;  %v502_v42 = vperm.slane %v641_v38, 0 }
  0xd9   : > { %v284_v28 = vmax.f32 %v283_v26, -100.0 }
  0xda   : > { %v288_v29 = vmax.f32 %v287_v27, -100.0 }
  0xdb   : > { %v289_v32 = vmul.f32 %v284_v28, %v263_v18 }
  0xdc   : > { %v291_v33 = vmul.f32 %v290_v31, %v288_v29 }
  0xde   : > { %v292_v34 = vadd.f32 %v291_v33, %v289_v32 }
  0xe0   : > { %v293_v35 = vsub.f32 0.0, %v292_v34 }
  0xe2   : > { %v492_v36 = vperm.slane %v293_v35, 0  ;;  %v498_v43 = vpop.permute.xlu1 %497 }
 0x10a   : > { %v330_v50 = vpop.xlane.xlu2 %329 }
 0x149   : > { %v485_v37 = vpop.f32.mrf.mxu0 }
 0x14a   : > { %v489_v39 = vsub.f32 1.0, %v485_v37  ;;  %v323_v40 = vpop.xlane.xlu0 %322 }
 0x14b   : > { %693 = vlog2.f32 %v323_v40 }
 0x14c   : > { %v494_v41 = vadd.f32 %v492_v36, %v489_v39 }
 0x14e   : > { %v500_v44 = vmul.f32 %v498_v43, %v494_v41 }
 0x150   : > { %v504_v45 = vmul.f32 %v502_v42, %v500_v44 }
 0x151   : > { %v694_v46 = vpop.eup %693  ;;  %v487_v47 = vpop.f32.mrf.mxu0 }
 0x152   : > { %v325_v48 = vmul.f32 0.6931472, %v694_v46  ;;  %506 = vadd.xlane.f32.xlu0 %v504_v45  ;;  %505 = vst [vmem:[%s261_s29] sm:$0xff] %v504_v45 }
 0x154   : > { %v326_v49 = vadd.f32 %v325_v48, %v317_v14 }
 0x156   : > { %v331_v51 = vsub.f32 %v326_v49, %v330_v50 }
 0x158   : > { %v332_v52 = vmul.f32 %v819_v23, %v331_v51 }
 0x15a   : > { %v334_v53 = vsel %vm333_vm4, %v332_v52, 0.0 }
 0x15b   : > { %335 = vadd.xlane.f32.xlu2 %v334_v53 }
 0x1c5   : > { %v507_v55 = vpop.xlane.xlu0 %506 }
 0x1c6   : > { %v508_v56 = vrot.slane %v507_v55, 4 }
 0x1c8   : > { %v509_v57 = vadd.f32 %v508_v56, %v507_v55 }
 0x1ca   : > { %v510_v58 = vrot.slane %v509_v57, 2 }
 0x1cc   : > { %v511_v62 = vadd.f32 %v510_v58, %v509_v57 }
 0x1ce   : > { %v336_v59 = vpop.xlane.xlu2 %335  ;;  %v512_v1 = vrot.slane %v511_v62, 1 }
 0x1cf   : > { %v337_v60 = vrot.slane %v336_v59, 4 }
 0x1d0   : > { %v513_v23 = vadd.f32 %v512_v1, %v511_v62 }
 0x1d1   : > { %v338_v61 = vadd.f32 %v337_v60, %v336_v59 }
 0x1d3   : > { %v339_v63 = vrot.slane %v338_v61, 2 }
 0x1d5   : > { %v340_v0 = vadd.f32 %v339_v63, %v338_v61 }
 0x1d7   : > { %v341_v2 = vrot.slane %v340_v0, 1 }
 0x1d9   : > { %v342_v3 = vadd.f32 %v341_v2, %v340_v0 }
 0x1db   : > { %666 = vpush %v342_v3 }
 0x1dc   : > { %668 = vpush %v513_v23 }
 0x209   : > { %518 = sbr.rel (%p663_p4) target bundleno = 720 (0x2d0), region = 44 }
 0x20c   : > { %s890_s30 = spop %666 }
 0x20d   : > { %s892_s7 = spop %668 }
 0x20e   : > { %v519_v22 = vmul.f32 %v643_v54, %v293_v35  ;;  %vm520_vm6 = vcmask 1040384   ;;  %vm542_vm7 = vcmp.eq.s32.totalorder %v822_v30, 0  ;;  %vm545_vm8 = vcmp.eq.s32.totalorder %v822_v30, 2 }
 0x20f   : > { %v532_v5 = vsel %vm520_vm6, %v641_v38, 0.0 }
 0x210   : > { %v521_v4 = vsel %vm520_vm6, %v519_v22, 0.0 }
 0x211   : > { %522 = vadd.xlane.f32.xlu0 %v521_v4 }
 0x219   : > { %533 = vadd.xlane.f32.xlu0 %v532_v5 }
 0x284   : > { %v523_v6 = vpop.xlane.xlu0 %522 }
 0x285   : > { %v524_v7 = vrot.slane %v523_v6, 4 }
 0x287   : > { %v525_v8 = vadd.f32 %v524_v7, %v523_v6 }
 0x289   : > { %v526_v9 = vrot.slane %v525_v8, 2 }
 0x28b   : > { %v527_v10 = vadd.f32 %v526_v9, %v525_v8 }
 0x28c   : > { %v534_v11 = vpop.xlane.xlu0 %533 }
 0x28d   : > { %v535_v12 = vrot.slane %v534_v11, 4  ;;  %v528_v13 = vrot.slane %v527_v10, 1 }
 0x28f   : > { %v536_v14 = vadd.f32 %v535_v12, %v534_v11  ;;  %v529_v15 = vadd.f32 %v528_v13, %v527_v10 }
 0x291   : > { %v537_v16 = vrot.slane %v536_v14, 2  ;;  %670 = vpush %v529_v15 }
 0x293   : > { %v538_v17 = vadd.f32 %v537_v16, %v536_v14 }
 0x295   : > { %v539_v19 = vrot.slane %v538_v17, 1 }
 0x297   : > { %v540_v20 = vadd.f32 %v539_v19, %v538_v17 }
 0x299   : > { %672 = vpush %v540_v20 }
 0x2c2   : > { %s671_s22 = spop %670 }
 0x2c3   : > { %s531_s8 = smul.f32 0.0625, %s671_s22 }
 0x2c5   : > { %v543_v21 = vstv %s531_s8 }
 0x2c6   : > { %v544_v25 = vsel %vm542_vm7, %v543_v21, 0.0 }
 0x2ca   : > { %s673_s9 = spop %672 }
 0x2cb   : > { %v546_v24 = vstv %s673_s9 }
 0x2cc   : > { %v547_v26 = vsel %vm545_vm8, %v546_v24, 0.0 }
 0x2cd   : > { %v548_v27 = vadd.f32 %v547_v26, %v544_v25 }
 0x2cf   : > { %549 = vst [vmem:[%s919_s6] sm:$0x1] %v548_v27 }
 0x2d0 PF: > { %vm551_vm9 = vcmp.eq.s32.totalorder %v822_v30, 1  ;;  %v552_v18 = vstv %s890_s30  ;;  %vm554_vm10 = vcmp.eq.s32.totalorder %v822_v30, 3  ;;  %v555_v28 = vstv %s892_s7 }
 0x2d1   : > { %v553_v31 = vsel %vm551_vm9, %v552_v18, 0.0  ;;  %v556_v32 = vsel %vm554_vm10, %v555_v28, 0.0 }
 0x2d2   : > { %v557_v33 = vadd.f32 %v556_v32, %v553_v31 }
 0x2d6   : > { %v550_v29 = vld [vmem:[%s919_s6] sm:$0x1] }
 0x2d7   : > { %v558_v34 = vadd.f32 %v557_v33, %v550_v29 }
 0x2d9   : > { %559 = vst [vmem:[%s919_s6] sm:$0x1] %v558_v34 }
 0x2da PF: > { %s17_s21 = sadd.s32 1, %s701_s21  }
 0x2db   : > { %p14_p5 = scmp.ge.s32.totalorder %s17_s21, 4  }
 0x2dd   :  { %16 = sbr.rel (!%p14_p5) target bundleno = 1 (0x1), region = 86 }

</bundles_post_ra>
